<compile_context>
chip_gen: v6e
topology: v6e:2x2x1
jax: 0.10.0
libtpu: 0.0.40
codegen_flags: <defaults>
</compile_context>

<pallas_src>
import functools

import jax
import jax.numpy as jnp
from jax.experimental import pallas as pl
from jax.experimental.pallas import tpu as pltpu


# ----------------------------- Pallas kernel ------------------------------ #

def _elr_linear_kernel(x_ref, w_ref, b_ref, o_ref, *, coef):
    """One (row-tile, col-tile) block of  y = coef * (x @ W) + b."""
    y = jnp.dot(x_ref[...], w_ref[...],
                preferred_element_type=jnp.float32)            # MXU, f32 acc
    y = y * coef + b_ref[...].astype(jnp.float32)              # VPU epilogue
    o_ref[...] = y.astype(o_ref.dtype)


# ------------------------------- helpers ----------------------------------- #

def _round_up(v, m):
    return ((v + m - 1) // m) * m


def _pick_col_tile(cout_p, max_tile=512):
    """Largest multiple of 128 that divides cout_p and is <= max_tile."""
    bc = min(cout_p, max_tile)
    while bc > 128 and cout_p % bc != 0:
        bc -= 128
    return bc


# ------------------------------- wrapper ----------------------------------- #

@functools.partial(jax.jit, static_argnames=("gain", "block_rows"))
def elr_linear(x, weight, bias, *, gain=1.0, block_rows=256):
    """ELR-wrapped Linear forward.

    x:      [N, C_in]
    weight: [C_out, C_in]       (PyTorch nn.Linear layout)
    bias:   [C_out]
    """
    n, cin = x.shape
    cout, cin_w = weight.shape
    assert cin_w == cin, "weight / input feature mismatch"

    # ELR coefficient: gain / sqrt(layer.weight[0].numel()) == gain / sqrt(C_in)
    coef = float(gain) / (float(cin) ** 0.5)

    # --- lane-dense output: pad C_out up to a multiple of 128 -------------- #
    cout_p = max(128, _round_up(cout, 128))
    bc = _pick_col_tile(cout_p)
    w_t = jnp.zeros((cin, cout_p), x.dtype).at[:, :cout].set(
        weight.T.astype(x.dtype))
    b_row = jnp.zeros((1, cout_p), x.dtype).at[0, :cout].set(
        bias.astype(x.dtype))

    # --- sublane-aligned row tiling over the batch -------------------------- #
    bn = max(8, _round_up(min(block_rows, n), 8))
    n_p = _round_up(n, bn)
    x_p = x if n_p == n else jnp.pad(x, ((0, n_p - n), (0, 0)))

    grid = (n_p // bn, cout_p // bc)
    kernel = functools.partial(_elr_linear_kernel, coef=coef)

    y_p = pl.pallas_call(
        kernel,
        out_shape=jax.ShapeDtypeStruct((n_p, cout_p), x.dtype),
        grid_spec=pltpu.PrefetchScalarGridSpec(
            num_scalar_prefetch=0,
            grid=grid,
            in_specs=[
                # x: tiled over batch rows, reused across all column tiles
                pl.BlockSpec((bn, cin), lambda i, j: (i, 0)),
                # weight / bias: depend only on the column tile -> each slab
                # DMA'd once, VMEM-resident across all row tiles
                pl.BlockSpec((cin, bc), lambda i, j: (0, j)),
                pl.BlockSpec((1, bc), lambda i, j: (0, j)),
            ],
            out_specs=pl.BlockSpec((bn, bc), lambda i, j: (i, j)),
        ),
        compiler_params=pltpu.CompilerParams(
            dimension_semantics=("parallel", "parallel")),
    )(x_p, w_t, b_row)

    # drop row padding and the lane-padding columns
    return y_p[:n, :cout]


# --------------------------------- main ------------------------------------ #

if __name__ == "__main__":
    key = jax.random.PRNGKey(0)
    k_w, k_b, k_x = jax.random.split(key, 3)

    batch = 64
    in_features = 32
    out_features = 96          # deliberately not a multiple of 128: exercises
                               # the lane-dense padding + slice path
    gain = 2.0 ** 0.5

    weight = jax.random.normal(k_w, (out_features, in_features), jnp.float32)
    bias = jax.random.normal(k_b, (out_features,), jnp.float32) * 0.1
    x = jax.random.normal(k_x, (batch, in_features), jnp.float32)

    y = elr_linear(x, weight, bias, gain=gain, block_rows=32)
    jax.block_until_ready(y)

    assert y.shape == (batch, out_features)

    # pure-JAX reference of ELR(Linear) forward
    coef = gain / (in_features ** 0.5)
    ref = (x * coef) @ weight.T + bias

    assert jnp.allclose(y, ref, atol=1e-5, rtol=1e-5), (
        float(jnp.max(jnp.abs(y - ref))))

    print("KERNEL_OK")
</pallas_src>

<mosaic_0001>
module attributes {stable_mosaic.version = 11 : i64} {
  func.func @_elr_linear_kernel(%arg0: i32, %arg1: i32, %arg2: memref<32x32xf32, #tpu.memory_space<vmem>>, %arg3: memref<32x128xf32, #tpu.memory_space<vmem>>, %arg4: memref<1x128xf32, #tpu.memory_space<vmem>>, %arg5: memref<32x128xf32, #tpu.memory_space<vmem>>) attributes {dimension_semantics = [#tpu.dimension_semantics<parallel>, #tpu.dimension_semantics<parallel>], iteration_bounds = array<i64: 2, 1>, scalar_prefetch = 0 : i64, scratch_operands = 0 : i64, tpu.core_type = #tpu.core_type<tc>, window_params = [{transform_indices = @transform_0, window_bounds = array<i64: 32, 32>}, {transform_indices = @transform_1, window_bounds = array<i64: 32, 128>}, {transform_indices = @transform_2, window_bounds = array<i64: 1, 128>}, {transform_indices = @transform_3, window_bounds = array<i64: 32, 128>}]} {
    %c0 = arith.constant 0 : index
    %c0_0 = arith.constant 0 : index
    %0 = vector.load %arg2[%c0, %c0_0] : memref<32x32xf32, #tpu.memory_space<vmem>>, vector<32x32xf32>
    %c0_1 = arith.constant 0 : index
    %c0_2 = arith.constant 0 : index
    %1 = vector.load %arg3[%c0_1, %c0_2] : memref<32x128xf32, #tpu.memory_space<vmem>>, vector<32x128xf32>
    %cst = arith.constant dense<0.000000e+00> : vector<32x128xf32>
    %2 = tpu.matmul %0, %1, %cst {dimension_numbers = #tpu.dot_dimension_numbers<[1], [0], [0], [1], [0, 0, 1, 1], [], []>} : vector<32x32xf32>, vector<32x128xf32>, vector<32x128xf32> -> vector<32x128xf32>
    %cst_3 = arith.constant 2.500000e-01 : f32
    %3 = vector.broadcast %cst_3 : f32 to vector<32x128xf32>
    %4 = arith.mulf %2, %3 : vector<32x128xf32>
    %c0_4 = arith.constant 0 : index
    %c0_5 = arith.constant 0 : index
    %5 = vector.load %arg4[%c0_4, %c0_5] : memref<1x128xf32, #tpu.memory_space<vmem>>, vector<1x128xf32>
    %6 = vector.broadcast %5 : vector<1x128xf32> to vector<32x128xf32>
    %7 = arith.addf %4, %6 : vector<32x128xf32>
    %c0_6 = arith.constant 0 : index
    %c0_7 = arith.constant 0 : index
    %8 = vector.load %arg5[%c0_6, %c0_7] : memref<32x128xf32, #tpu.memory_space<vmem>>, vector<32x128xf32>
    tpu.vector_store %arg5[%c0_6, %c0_7], %7 {strides = array<i32>} : memref<32x128xf32, #tpu.memory_space<vmem>>, vector<32x128xf32>,
    return
  }
  func.func @transform_0(%arg0: i32, %arg1: i32) -> (i32, i32) {
    %c0_i32 = arith.constant 0 : i32
    %c0_i32_0 = arith.constant 0 : i32
    return %arg0, %c0_i32 : i32, i32
  }
  func.func @transform_1(%arg0: i32, %arg1: i32) -> (i32, i32) {
    %c0_i32 = arith.constant 0 : i32
    %c0_i32_0 = arith.constant 0 : i32
    return %c0_i32, %arg1 : i32, i32
  }
  func.func @transform_2(%arg0: i32, %arg1: i32) -> (i32, i32) {
    %c0_i32 = arith.constant 0 : i32
    %c0_i32_0 = arith.constant 0 : i32
    return %c0_i32, %arg1 : i32, i32
  }
  func.func @transform_3(%arg0: i32, %arg1: i32) -> (i32, i32) {
    %c0_i32 = arith.constant 0 : i32
    return %arg0, %arg1 : i32, i32
  }
}

</mosaic_0001>

<bundles_post_ra>
// kernel: elr_linear.1
= control target key start
LH: loop header
LB: loop body
LE: loop exit
PB: predicated region body
PF: predicated region fallthrough
CT: control target
= control target key end

     0   :  { %8 = vsyncpa [#allocation3], 0  ;;  %s793_s0 = inlined_call_operand.vmem [shape: f32[64,32], index: 0, kind: input, shape index: {}]   ;;  %s794_s1 = inlined_call_operand.vmem [shape: f32[32,128], index: 1, kind: input, shape index: {}]   ;;  %s795_s2 = inlined_call_operand.vmem [shape: f32[1,128], index: 2, kind: input, shape index: {}]   ;;  %s796_s3 = inlined_call_operand.hbm [shape: f32[64,128], index: 3, kind: output, shape index: {}]  }
   0x1   :  { %10 = vsyncpa [#allocation3 + $0x1], 0  ;;  %s665_s12 = smov 0   ;;  %s667_s13 = smov 0  }
   0x2   :  { %s669_s14 = smov 0   ;;  %s671_s15 = smov 0  }
   0x3   :  { %s673_s16 = smov 0   ;;  %s675_s17 = smov 0  }
   0x4 LB: > { %s456_s18 = sadd.s32 4294967295, %s640_s17   ;;  %s457_s19 = sadd.s32 4294967294, %s640_s17   ;;  %s640_s17 = sphi %s675_s17, %s16_s17   ;;  %s636_s16 = sphi %s673_s16, %s803_s16   ;;  %s632_s15 = sphi %s671_s15, %s802_s15   ;;  %s628_s14 = sphi %s669_s14, %s801_s14   ;;  %s624_s13 = sphi %s667_s13, %s800_s13   ;;  %s620_s12 = sphi %s665_s12, %s799_s12  }
   0x5   : > { %s28_s20 = sadd.s32 1, %s636_s16  ;;  %s115_s21 = sadd.s32 1, %s628_s14 }
   0x6   : > { %p30_p0 = scmp.ge.s32.totalorder %s28_s20, 2  ;;  %p125_p1 = scmp.ne.s32.totalorder %s628_s14, %s624_s13 }
   0x7   : > { %p126_p2 = scmp.eq.s32.totalorder %s456_s18, 1  ;;  %p131_p3 = scmp.ne.s32.totalorder %s624_s13, %s620_s12 }
   0x8   : > { %s805_s20 = smov (%p30_p0, %s28_s20), 0  ;;  %p132_p5 = scmp.eq.s32.totalorder %s457_s19, 1 }
   0x9   : > { %p705_p4 = por %p126_p2, %p125_p1  ;;  %s110_s23 = ssub.s32 %s636_s16, %s805_s20 }
   0xa   : > { %p462_p6 = scmp.ge.s32.totalorder %s640_s17, 1  ;;  %p113_p7 = scmp.eq.s32.totalorder %s110_s23, 0 }
   0xb   : > { %p712_p8 = por %p132_p5, %p131_p3  ;;  %p172_p9 = scmp.lt.s32.totalorder %s640_s17, 3 }
   0xc   : > { %s718_s25 = scalar_select %p113_p7, %s628_s14, %s115_s21  }
   0xd   : > { %p173_p10 = pnand %p462_p6, %p172_p9 }
   0xe   : > { %s464_s30 = sshll.u32 (!%p173_p10), %s632_s15, 2  ;;  %s200_s18 = sand.u32 (!%p173_p10), 1, %s624_s13  }
   0xf   : > { %176 = sbr.rel (%p173_p10) target bundleno = 243 (0xf3), region = 32  ;;  %p204_p11 = scmp.lt.s32.totalorder (!%p173_p10), %s464_s30, 7 }
  0x10   : > { %s463_s19 = sshll.u32 (!%p173_p10), %s200_s18, 5  ;;  %s476_s28 = sshll.u32 (!%p173_p10), %s632_s15, 9 }
  0x11   : > { %s202_s26 = scalar_lea.vmem (!%p173_p10), [#allocation2], %s463_s19  ;;  %s746_s4 = scalar_lea.hbm (!%p173_p10), %s796_s3, %s476_s28 }
  0x12   : > { %s357_s27 = sshll.u32 (!%p173_p10), %s202_s26, 4  ;;  %s748_s15 = scalar_lea.sflag (!%p173_p10), [#allocation3], %s200_s18  ;;  %s741_s27 = int_to_ptr.vmem [resolvable:$true] %s357_s27 }
  0x13   : > { %s564_s5 = scalar_lea.vmem (!%p173_p10), %s741_s27, 512  ;;  %s642_s6 = smov (!%p173_p10), [#allocation2]  }
  0x14   : > { %v224_v0 = vld [vmem:[%s794_s1 + $0x18] sm:$0xff]  ;;  %v223_v1 = vld [vmem:[%s794_s1 + $0x10] sm:$0xff]  ;;  %v222_v2 = vld [vmem:[%s794_s1 + $0x8] sm:$0xff]  ;;  %s807_s30 = smov (!%p204_p11, %s464_s30), 7  ;;  %vm225_vm0 = vcmask 261120   ;;  %p565_p12 = scmp.ne.s32.totalorder %s741_s27, %s564_s5 }
  0x15   : > { %485 = vmatprep.subr.mxu0 %v224_v0  ;;  %499 = vmatprep.subr.mxu1 %v224_v0  ;;  %v221_v3 = vld [vmem:[%s794_s1] sm:$0xff]  ;;  %s465_s8 = sshll.u32 %s807_s30, 3  ;;  %s568_s7 = sshll.u32 %s642_s6, 4  ;;  %s569_s7 = int_to_ptr.vmem [resolvable:$false] %s568_s7 }
  0x16   : > { %486 = vmatpush3.msra.mxu0 %v224_v0  ;;  %503 = vmatpush3.msra.mxu1 %v224_v0  ;;  %s207_s11 = scalar_lea.vmem %s793_s0, %s465_s8  ;;  %v470_v9 = vld [vmem:[%s795_s2] ss:$0 sm:$0xff]  ;;  %p566_p13 = pnand %p565_p12, %p705_p4 }
  0x17   : > { %487 = vmatprep.subr.mxu0 %v223_v1  ;;  %500 = vmatprep.subr.mxu1 %v223_v1  ;;  %v217_v4 = vld [vmem:[%s207_s11] sm:$0xff]  ;;  %v219_v5 = vld [vmem:[%s207_s11 + $0x10] sm:$0xff]  ;;  %v218_v6 = vld [vmem:[%s207_s11 + $0x8] sm:$0xff]  ;;  %s570_s8 = scalar_lea.vmem %s569_s7, 1024  ;;  %p571_p1 = scmp.lt.s32.totalorder %s741_s27, %s569_s7 }
  0x18   : > { %488 = vmatpush3.msra.mxu0 %v223_v1  ;;  %504 = vmatpush3.msra.mxu1 %v223_v1  ;;  %v220_v7 = vld [vmem:[%s207_s11 + $0x18] sm:$0xff]  ;;  %p567_p0 = pneg %p566_p13  ;;  %p572_p2 = scmp.lt.s32.totalorder %s570_s8, %s564_s5 }
  0x19   : > { %489 = vmatprep.subr.mxu0 %v222_v2  ;;  %501 = vmatprep.subr.mxu1 %v222_v2 }
  0x1a   : > { %490 = vmatpush3.msra.mxu0 %v222_v2  ;;  %505 = vmatpush3.msra.mxu1 %v222_v2  ;;  %p573_p3 = por %p572_p2, %p571_p1 }
  0x1b   : > { %491 = vmatprep.subr.mxu0 %v221_v3  ;;  %502 = vmatprep.subr.mxu1 %v221_v3 }
  0x1c   : > { %492 = vmatpush3.msra.mxu0 %v221_v3  ;;  %506 = vmatpush3.msra.mxu1 %v221_v3  ;;  %p574_p5 = pnand %p573_p3, %p567_p0 }
  0x1d   : > { %493 = vmatprep.mubr.msk.f32.mxu0 %vm225_vm0, %v217_v4  ;;  %496 = vmatprep.mubr.msk.f32.mxu1 %vm225_vm0, %v219_v5 }
  0x1e   : > { %494 = vmatmul.mubr.msk.f32.vlgmr.msra.gmra.mxu0 %vm225_vm0, %v218_v6  ;;  %497 = vmatmul.mubr.msk.f32.vlgmr.msra.gmra.mxu1 %vm225_vm0, %v220_v7 }
  0xde   : > { %v495_v8 = vpop.f32.mrf.mxu0  ;;  %v498_v10 = vpop.f32.mrf.mxu1 }
  0xdf   : > { %v324_v11 = vmul.f32 0.25, %v495_v8  ;;  %v326_v12 = vmul.f32 0.25, %v498_v10 }
  0xe0   : > { %v304_v13 = vpop.f32.mrf.mxu0  ;;  %v314_v14 = vpop.f32.mrf.mxu1 }
  0xe1   : > { %v335_v15 = vadd.f32 %v470_v9, %v324_v11  ;;  %v337_v16 = vadd.f32 %v470_v9, %v326_v12  ;;  %v323_v17 = vmul.f32 0.25, %v304_v13  ;;  %v325_v18 = vmul.f32 0.25, %v314_v14 }
  0xe3   : > { %339 = vst [vmem:[%s202_s26 + $0x8] sm:$0xff] %v335_v15  ;;  %341 = vst [vmem:[%s202_s26 + $0x18] sm:$0xff] %v337_v16  ;;  %v334_v19 = vadd.f32 %v470_v9, %v323_v17  ;;  %v336_v20 = vadd.f32 %v470_v9, %v325_v18 }
  0xe5   : > { %338 = vst [vmem:[%s202_s26] sm:$0xff] %v334_v19  ;;  %340 = vst [vmem:[%s202_s26 + $0x10] sm:$0xff] %v336_v20 }
  0xe6   : > { %577 = shalt.err (!%p574_p5)
}
  0xe7   : > { %s578_s9 = scalar_lea.hbm %s746_s4, 512  ;;  %s582_s18 = scalar_lea.hbm %s796_s3, 1024 }
  0xe8   : > { %p579_p6 = scmp.ne.s32.totalorder %s746_s4, %s578_s9  ;;  %p583_p10 = scmp.lt.s32.totalorder %s746_s4, %s796_s3 }
  0xe9   : > { %p584_p11 = scmp.lt.s32.totalorder %s582_s18, %s578_s9 }
  0xea   : > { %p580_p7 = pnand %p579_p6, %p705_p4 }
  0xeb   : > { %p585_p12 = por %p584_p11, %p583_p10 }
  0xec   : > { %p581_p9 = pneg %p580_p7 }
  0xee   : > { %p586_p13 = pnand %p585_p12, %p581_p9 }
  0xf0   : > { %589 = shalt.err (!%p586_p13)
}
  0xf1   : > { %s643_s23 = smov 128   ;;  %s644_s26 = smov 8  }
  0xf2   : > { %507 = dma.vmem_to_hbm [thread:$0]  (%p705_p4), %s741_s27, 512, %s746_s4, %s748_s15, %s643_s23, %s643_s23, %s644_s26  }
  0xf3 PF: > { %p513_p0 = scmp.ge.s32.totalorder %s640_s17, 2  ;;  %s372_s28 = sand.u32 1, %s620_s12  }
  0xf4   : > { %s373_s29 = scalar_lea.sflag [#allocation3], %s372_s28 }
  0xf5   : > { %p510_p1 = pnand %p513_p0, %p712_p8 }
  0xf7   : > { %p511_p2 = pneg %p510_p1 }
  0xf9   : > { %615 = dma.done.wait (%p511_p2), %s373_s29, 512  }
  0xfa   : > { %617 = vsyncadd (%p511_p2), %s373_s29, 4294966784  ;;  %s16_s17 = sadd.s32 1, %s640_s17   ;;  %s799_s12 = smov %s624_s13 }
  0xfb   : > { %p13_p3 = scmp.ge.s32.totalorder %s16_s17, 4   ;;  %s800_s13 = smov %s628_s14 }
  0xfc   : > { %s801_s14 = smov %s718_s25  ;;  %s802_s15 = smov %s636_s16 }
  0xfd   : > { %s803_s16 = smov %s805_s20  ;;  %15 = sbr.rel (!%p13_p3) target bundleno = 4 (0x4), region = 73 }
 0x102   :  { %378 = vsyncpa [#allocation3], 1 }
 0x103   :  { %380 = vsyncpa [#allocation3 + $0x1], 1 }

</bundles_post_ra>
